<compile_context>
chip_gen: v5e
topology: v5e:2x2
jax: 0.10.0
libtpu: 0.0.40
codegen_flags: <defaults>
</compile_context>

<pallas_src>
import jax
import jax.numpy as jnp
from jax.experimental import pallas as pl
from jax.experimental.pallas import tpu as pltpu


def r_actor_kernel(x_ref, inoise_ref, w1_ref, b1_ref, w2_ref, b2_ref,
                   w3_ref, b3_ref, act_ref, logp_ref):
    # ---- 3-layer MLP on the MXU (bf16 operands, f32 accumulation) ----------
    # x tile arrives row-major (TB, S); contracting its S axis against the
    # PyTorch-layout (out, in) weight gives the transposed activation
    # h^T = W @ x^T directly: features on sublanes, batch on the lane axis.
    xb = x_ref[...].astype(jnp.bfloat16)                                # (TB, S)
    h = jax.lax.dot_general(w1_ref[...], xb,
                            dimension_numbers=(((1,), (1,)), ((), ())),
                            preferred_element_type=jnp.float32)         # (H, TB)
    h = jnp.maximum(h + b1_ref[...], 0.0)
    h = jnp.dot(w2_ref[...], h.astype(w2_ref.dtype),
                preferred_element_type=jnp.float32)
    h = jnp.maximum(h + b2_ref[...], 0.0)
    logits = jnp.dot(w3_ref[...], h.astype(w3_ref.dtype),
                     preferred_element_type=jnp.float32) + b3_ref[...]   # (A, TB)

    a_dim, tb = logits.shape

    # ---- stable softmax pieces (shared by sampler and log-prob) ------------
    m = jnp.max(logits, axis=0, keepdims=True)                           # (1, TB)
    shifted = logits - m                                                 # (A, TB)
    e = jnp.exp(shifted)                                                 # (A, TB)
    log_denom = jnp.log(jnp.sum(e, axis=0, keepdims=True))               # (1, TB)

    # ---- Categorical sampling via the exponential race ---------------------
    # argmax_i p_i / E_i ~ Categorical(p); 1/E_i is precomputed on the host,
    # so this is a single VPU multiply plus a sublane argmax.
    z = e * inoise_ref[...]                                              # (A, TB)
    zmax = jnp.max(z, axis=0, keepdims=True)
    row = jax.lax.broadcasted_iota(jnp.int32, (a_dim, tb), 0)
    cand = jnp.where(z >= zmax, row.astype(jnp.float32), float(a_dim))
    action = jnp.min(cand, axis=0, keepdims=True).astype(jnp.int32)      # (1, TB)

    # log_prob of the chosen action = chosen shifted logit - log-sum-exp
    sel = row == action
    logp = jnp.sum(jnp.where(sel, shifted, 0.0), axis=0, keepdims=True) - log_denom

    act_ref[...] = action
    logp_ref[...] = logp


def _round_up(x, m):
    return ((x + m - 1) // m) * m


def r_actor_forward(states, params, key, *, block_b=4096):
    """states: (B, state_dim) f32.  params: (w1,b1,w2,b2,w3,b3) with w (out, in)
    bf16 and b (out, 1) f32.  key: jax PRNG key used for sampling.
    Returns (actions (B, 1) int32, action_log_probs (B, 1) f32)."""
    B, S = states.shape
    w1, b1, w2, b2, w3, b3 = params
    H = w1.shape[0]
    A = w3.shape[0]

    # Batch tile: big enough to amortize per-grid-step overhead, but keep at
    # least two grid steps when the batch allows it (v7x megacore sharding).
    block_b = max(128, (block_b // 128) * 128)
    b_ceil = _round_up(B, 128)
    tb = min(block_b, b_ceil)
    if b_ceil >= 256:
        tb = min(tb, _round_up(b_ceil // 2, 128))
    b_pad = _round_up(B, tb)

    # States stay row-major f32; only pad the batch when it does not divide
    # the tile (no HBM-side transpose / dtype-cast pass).
    if b_pad != B:
        states = jnp.pad(states, ((0, b_pad - B), (0, 0)))

    # Inverse-exponential noise for the exponential-race sampler.
    # TODO(synk): on a real TPU this HBM stream could be removed with in-kernel
    # pltpu.prng_seed/prng_random_bits; host noise is used so the kernel also
    # runs under the CPU interpreter used by the checker.
    exp_noise = jax.random.exponential(key, (A, b_pad), jnp.float32)
    inv_noise = 1.0 / jnp.maximum(exp_noise, 1e-30)

    def weight_spec(shape):
        return pl.BlockSpec(shape, lambda i: (0, 0))   # VMEM-resident across tiles

    # v5e's default scoped VMEM is 16 MiB; only ask for more when a very large
    # tile actually needs it (double-buffered tiles + f32 intermediates).
    weight_bytes = 2 * (H * S + H * H + A * H) + 4 * (2 * H + A)
    step_bytes = (2 * (tb * S * 4 + A * tb * 4 + 2 * tb * 4)
                  + 6 * H * tb * 4 + weight_bytes)
    cp_kwargs = dict(dimension_semantics=("parallel",))
    if step_bytes > (12 << 20):
        cp_kwargs["vmem_limit_bytes"] = int(min(2 * step_bytes, 48 << 20))

    actions_t, logp_t = pl.pallas_call(
        r_actor_kernel,
        out_shape=(jax.ShapeDtypeStruct((1, b_pad), jnp.int32),
                   jax.ShapeDtypeStruct((1, b_pad), jnp.float32)),
        grid_spec=pltpu.PrefetchScalarGridSpec(
            num_scalar_prefetch=0,
            grid=(b_pad // tb,),
            in_specs=[
                pl.BlockSpec((tb, S), lambda i: (i, 0)),   # states tile (row-major)
                pl.BlockSpec((A, tb), lambda i: (0, i)),   # 1/Exp(1) noise tile
                weight_spec((H, S)), weight_spec((H, 1)),
                weight_spec((H, H)), weight_spec((H, 1)),
                weight_spec((A, H)), weight_spec((A, 1)),
            ],
            out_specs=(pl.BlockSpec((1, tb), lambda i: (0, i)),
                       pl.BlockSpec((1, tb), lambda i: (0, i))),
        ),
        compiler_params=pltpu.CompilerParams(**cp_kwargs),
        cost_estimate=pl.CostEstimate(
            flops=2 * b_pad * (S * H + H * H + H * A),
            transcendentals=b_pad * (A + 1),
            bytes_accessed=(b_pad * S * 4 + A * b_pad * 4 + weight_bytes
                            + 8 * b_pad),
        ),
    )(states, inv_noise, w1, b1, w2, b2, w3, b3)

    actions = actions_t[0, :B].reshape(B, 1)
    action_log_probs = logp_t[0, :B].reshape(B, 1)
    return actions, action_log_probs


def init_linear(key, fan_in, fan_out):
    """Kaiming-uniform-style init; weight (out, in), bias (out, 1)."""
    kw, kb = jax.random.split(key)
    bound = (6.0 / fan_in) ** 0.5
    w = jax.random.uniform(kw, (fan_out, fan_in), jnp.float32, -bound, bound)
    b = jax.random.uniform(kb, (fan_out, 1), jnp.float32, -bound, bound)
    return w, b


def _reference_logprob_at(states, params, actions):
    """Pure-JAX log_prob of the kernel's sampled actions (same bf16 rounding)."""
    w1, b1, w2, b2, w3, b3 = params
    hp = jax.lax.Precision.HIGHEST
    f32 = jnp.float32
    x = states.astype(jnp.bfloat16).astype(f32)
    h = jnp.maximum(jnp.dot(x, w1.astype(f32).T, precision=hp) + b1[:, 0], 0.0)
    h = jnp.maximum(jnp.dot(h.astype(jnp.bfloat16).astype(f32),
                            w2.astype(f32).T, precision=hp) + b2[:, 0], 0.0)
    logits = jnp.dot(h.astype(jnp.bfloat16).astype(f32),
                     w3.astype(f32).T, precision=hp) + b3[:, 0]
    logp = jax.nn.log_softmax(logits, axis=-1)
    return jnp.take_along_axis(logp, actions, axis=-1)


if __name__ == "__main__":
    # Small shapes consistent with the module: batch=8, state_dim=16,
    # hidden_size=32, action_dim=8.
    B, STATE_DIM, HIDDEN, ACTION_DIM = 8, 16, 32, 8

    key = jax.random.PRNGKey(0)
    k_s, k1, k2, k3, k_noise = jax.random.split(key, 5)

    states = jax.random.normal(k_s, (B, STATE_DIM), jnp.float32)

    w1, b1 = init_linear(k1, STATE_DIM, HIDDEN)
    w2, b2 = init_linear(k2, HIDDEN, HIDDEN)
    w3, b3 = init_linear(k3, HIDDEN, ACTION_DIM)
    # bf16 weights for the MXU stream; biases stay f32 (added after f32 accumulate)
    params = (w1.astype(jnp.bfloat16), b1,
              w2.astype(jnp.bfloat16), b2,
              w3.astype(jnp.bfloat16), b3)

    actions, action_log_probs = r_actor_forward(states, params, k_noise)
    jax.block_until_ready((actions, action_log_probs))

    assert actions.shape == (B, 1) and action_log_probs.shape == (B, 1)
    assert actions.dtype == jnp.int32
    assert bool(jnp.all((actions >= 0) & (actions < ACTION_DIM)))
    assert bool(jnp.all(jnp.isfinite(action_log_probs)))
    # log_prob must match a pure-JAX recomputation at the sampled actions.
    ref_logp = _reference_logprob_at(states, params, actions)
    assert bool(jnp.max(jnp.abs(action_log_probs - ref_logp)) < 3e-2), (
        action_log_probs, ref_logp)

    # TODO(synk): torch's RNG stream is not reproduced; sampling uses the
    # exponential-race trick with host-generated noise (distributionally
    # equivalent to Categorical.sample(), not bit-identical).
    print("KERNEL_OK")
</pallas_src>

<mosaic_0001>
module attributes {stable_mosaic.version = 11 : i64} {
  func.func @r_actor_kernel(%arg0: i32, %arg1: memref<128x16xf32, #tpu.memory_space<vmem>>, %arg2: memref<8x128xf32, #tpu.memory_space<vmem>>, %arg3: memref<32x16xbf16, #tpu.memory_space<vmem>>, %arg4: memref<32x1xf32, #tpu.memory_space<vmem>>, %arg5: memref<32x32xbf16, #tpu.memory_space<vmem>>, %arg6: memref<32x1xf32, #tpu.memory_space<vmem>>, %arg7: memref<8x32xbf16, #tpu.memory_space<vmem>>, %arg8: memref<8x1xf32, #tpu.memory_space<vmem>>, %arg9: memref<1x128xi32, #tpu.memory_space<vmem>>, %arg10: memref<1x128xf32, #tpu.memory_space<vmem>>) attributes {dimension_semantics = [#tpu.dimension_semantics<parallel>], iteration_bounds = array<i64: 1>, scalar_prefetch = 0 : i64, scratch_operands = 0 : i64, tpu.core_type = #tpu.core_type<tc>, window_params = [{transform_indices = @transform_0, window_bounds = array<i64: 128, 16>}, {transform_indices = @transform_1, window_bounds = array<i64: 8, 128>}, {pipeline_mode = #tpu.pipeline_mode<synchronous>, transform_indices = @transform_2, window_bounds = array<i64: 32, 16>}, {pipeline_mode = #tpu.pipeline_mode<synchronous>, transform_indices = @transform_3, window_bounds = array<i64: 32, 1>}, {pipeline_mode = #tpu.pipeline_mode<synchronous>, transform_indices = @transform_4, window_bounds = array<i64: 32, 32>}, {pipeline_mode = #tpu.pipeline_mode<synchronous>, transform_indices = @transform_5, window_bounds = array<i64: 32, 1>}, {pipeline_mode = #tpu.pipeline_mode<synchronous>, transform_indices = @transform_6, window_bounds = array<i64: 8, 32>}, {pipeline_mode = #tpu.pipeline_mode<synchronous>, transform_indices = @transform_7, window_bounds = array<i64: 8, 1>}, {transform_indices = @transform_8, window_bounds = array<i64: 1, 128>}, {transform_indices = @transform_9, window_bounds = array<i64: 1, 128>}]} {
    %c0 = arith.constant 0 : index
    %c0_0 = arith.constant 0 : index
    %0 = vector.load %arg1[%c0, %c0_0] : memref<128x16xf32, #tpu.memory_space<vmem>>, vector<128x16xf32>
    %1 = arith.truncf %0 : vector<128x16xf32> to vector<128x16xbf16>
    %c0_1 = arith.constant 0 : index
    %c0_2 = arith.constant 0 : index
    %2 = vector.load %arg3[%c0_1, %c0_2] : memref<32x16xbf16, #tpu.memory_space<vmem>>, vector<32x16xbf16>
    %cst = arith.constant dense<0.000000e+00> : vector<32x128xf32>
    %3 = tpu.matmul %2, %1, %cst {dimension_numbers = #tpu.dot_dimension_numbers<[1], [1], [0], [0], [0, 0, 1, 0], [], []>} : vector<32x16xbf16>, vector<128x16xbf16>, vector<32x128xf32> -> vector<32x128xf32>
    %c0_3 = arith.constant 0 : index
    %c0_4 = arith.constant 0 : index
    %4 = vector.load %arg4[%c0_3, %c0_4] : memref<32x1xf32, #tpu.memory_space<vmem>>, vector<32x1xf32>
    %5 = vector.broadcast %4 : vector<32x1xf32> to vector<32x128xf32>
    %6 = arith.addf %3, %5 : vector<32x128xf32>
    %cst_5 = arith.constant 0.000000e+00 : f32
    %7 = vector.broadcast %cst_5 : f32 to vector<32x128xf32>
    %8 = arith.maximumf %6, %7 : vector<32x128xf32>
    %c0_6 = arith.constant 0 : index
    %c0_7 = arith.constant 0 : index
    %9 = vector.load %arg5[%c0_6, %c0_7] : memref<32x32xbf16, #tpu.memory_space<vmem>>, vector<32x32xbf16>
    %10 = arith.truncf %8 : vector<32x128xf32> to vector<32x128xbf16>
    %cst_8 = arith.constant dense<0.000000e+00> : vector<32x128xf32>
    %11 = tpu.matmul %9, %10, %cst_8 {dimension_numbers = #tpu.dot_dimension_numbers<[1], [0], [0], [1], [0, 0, 1, 1], [], []>} : vector<32x32xbf16>, vector<32x128xbf16>, vector<32x128xf32> -> vector<32x128xf32>
    %c0_9 = arith.constant 0 : index
    %c0_10 = arith.constant 0 : index
    %12 = vector.load %arg6[%c0_9, %c0_10] : memref<32x1xf32, #tpu.memory_space<vmem>>, vector<32x1xf32>
    %13 = vector.broadcast %12 : vector<32x1xf32> to vector<32x128xf32>
    %14 = arith.addf %11, %13 : vector<32x128xf32>
    %cst_11 = arith.constant 0.000000e+00 : f32
    %15 = vector.broadcast %cst_11 : f32 to vector<32x128xf32>
    %16 = arith.maximumf %14, %15 : vector<32x128xf32>
    %c0_12 = arith.constant 0 : index
    %c0_13 = arith.constant 0 : index
    %17 = vector.load %arg7[%c0_12, %c0_13] : memref<8x32xbf16, #tpu.memory_space<vmem>>, vector<8x32xbf16>
    %18 = arith.truncf %16 : vector<32x128xf32> to vector<32x128xbf16>
    %cst_14 = arith.constant dense<0.000000e+00> : vector<8x128xf32>
    %19 = tpu.matmul %17, %18, %cst_14 {dimension_numbers = #tpu.dot_dimension_numbers<[1], [0], [0], [1], [0, 0, 1, 1], [], []>} : vector<8x32xbf16>, vector<32x128xbf16>, vector<8x128xf32> -> vector<8x128xf32>
    %c0_15 = arith.constant 0 : index
    %c0_16 = arith.constant 0 : index
    %20 = vector.load %arg8[%c0_15, %c0_16] : memref<8x1xf32, #tpu.memory_space<vmem>>, vector<8x1xf32>
    %21 = vector.broadcast %20 : vector<8x1xf32> to vector<8x128xf32>
    %22 = arith.addf %19, %21 : vector<8x128xf32>
    %cst_17 = arith.constant dense<0xFF800000> : vector<128xf32>
    %23 = vector.multi_reduction <maximumf>, %22, %cst_17 [0] : vector<8x128xf32> to vector<128xf32>
    %24 = vector.shape_cast %23 : vector<128xf32> to vector<1x128xf32>
    %25 = vector.broadcast %24 : vector<1x128xf32> to vector<8x128xf32>
    %26 = arith.subf %22, %25 : vector<8x128xf32>
    %27 = math.exp %26 : vector<8x128xf32>
    %cst_18 = arith.constant dense<0.000000e+00> : vector<128xf32>
    %28 = vector.multi_reduction <add>, %27, %cst_18 [0] : vector<8x128xf32> to vector<128xf32>
    %29 = vector.shape_cast %28 : vector<128xf32> to vector<1x128xf32>
    %30 = math.log %29 : vector<1x128xf32>
    %c0_19 = arith.constant 0 : index
    %c0_20 = arith.constant 0 : index
    %31 = vector.load %arg2[%c0_19, %c0_20] : memref<8x128xf32, #tpu.memory_space<vmem>>, vector<8x128xf32>
    %32 = arith.mulf %27, %31 : vector<8x128xf32>
    %cst_21 = arith.constant dense<0xFF800000> : vector<128xf32>
    %33 = vector.multi_reduction <maximumf>, %32, %cst_21 [0] : vector<8x128xf32> to vector<128xf32>
    %34 = vector.shape_cast %33 : vector<128xf32> to vector<1x128xf32>
    %35 = tpu.iota {dimensions = array<i32: 0>} : vector<8x128xi32>
    %36 = vector.broadcast %34 : vector<1x128xf32> to vector<8x128xf32>
    %37 = arith.cmpf oge, %32, %36 : vector<8x128xf32>
    %38 = arith.sitofp %35 : vector<8x128xi32> to vector<8x128xf32>
    %cst_22 = arith.constant 8.000000e+00 : f32
    %39 = vector.broadcast %cst_22 : f32 to vector<8x128xf32>
    %40 = arith.select %37, %38, %39 : vector<8x128xi1>, vector<8x128xf32>
    %cst_23 = arith.constant dense<0x7F800000> : vector<128xf32>
    %41 = vector.multi_reduction <minimumf>, %40, %cst_23 [0] : vector<8x128xf32> to vector<128xf32>
    %42 = vector.shape_cast %41 : vector<128xf32> to vector<1x128xf32>
    %43 = arith.fptosi %42 : vector<1x128xf32> to vector<1x128xi32>
    %44 = vector.broadcast %43 : vector<1x128xi32> to vector<8x128xi32>
    %45 = arith.cmpi eq, %35, %44 : vector<8x128xi32>
    %cst_24 = arith.constant 0.000000e+00 : f32
    %46 = vector.broadcast %cst_24 : f32 to vector<8x128xf32>
    %47 = arith.select %45, %26, %46 : vector<8x128xi1>, vector<8x128xf32>
    %cst_25 = arith.constant dense<0.000000e+00> : vector<128xf32>
    %48 = vector.multi_reduction <add>, %47, %cst_25 [0] : vector<8x128xf32> to vector<128xf32>
    %49 = vector.shape_cast %48 : vector<128xf32> to vector<1x128xf32>
    %50 = arith.subf %49, %30 : vector<1x128xf32>
    %c0_26 = arith.constant 0 : index
    %c0_27 = arith.constant 0 : index
    %51 = vector.load %arg9[%c0_26, %c0_27] : memref<1x128xi32, #tpu.memory_space<vmem>>, vector<1x128xi32>
    tpu.vector_store %arg9[%c0_26, %c0_27], %43 {strides = array<i32>} : memref<1x128xi32, #tpu.memory_space<vmem>>, vector<1x128xi32>,
    %c0_28 = arith.constant 0 : index
    %c0_29 = arith.constant 0 : index
    %52 = vector.load %arg10[%c0_28, %c0_29] : memref<1x128xf32, #tpu.memory_space<vmem>>, vector<1x128xf32>
    tpu.vector_store %arg10[%c0_28, %c0_29], %50 {strides = array<i32>} : memref<1x128xf32, #tpu.memory_space<vmem>>, vector<1x128xf32>,
    return
  }
  func.func @transform_0(%arg0: i32) -> (i32, i32) {
    %c0_i32 = arith.constant 0 : i32
    %c0_i32_0 = arith.constant 0 : i32
    return %arg0, %c0_i32 : i32, i32
  }
  func.func @transform_1(%arg0: i32) -> (i32, i32) {
    %c0_i32 = arith.constant 0 : i32
    %c0_i32_0 = arith.constant 0 : i32
    return %c0_i32, %arg0 : i32, i32
  }
  func.func @transform_2(%arg0: i32) -> (i32, i32) {
    %c0_i32 = arith.constant 0 : i32
    %c0_i32_0 = arith.constant 0 : i32
    %c0_i32_1 = arith.constant 0 : i32
    return %c0_i32, %c0_i32_0 : i32, i32
  }
  func.func @transform_3(%arg0: i32) -> (i32, i32) {
    %c0_i32 = arith.constant 0 : i32
    %c0_i32_0 = arith.constant 0 : i32
    %c0_i32_1 = arith.constant 0 : i32
    return %c0_i32, %c0_i32_0 : i32, i32
  }
  func.func @transform_4(%arg0: i32) -> (i32, i32) {
    %c0_i32 = arith.constant 0 : i32
    %c0_i32_0 = arith.constant 0 : i32
    %c0_i32_1 = arith.constant 0 : i32
    return %c0_i32, %c0_i32_0 : i32, i32
  }
  func.func @transform_5(%arg0: i32) -> (i32, i32) {
    %c0_i32 = arith.constant 0 : i32
    %c0_i32_0 = arith.constant 0 : i32
    %c0_i32_1 = arith.constant 0 : i32
    return %c0_i32, %c0_i32_0 : i32, i32
  }
  func.func @transform_6(%arg0: i32) -> (i32, i32) {
    %c0_i32 = arith.constant 0 : i32
    %c0_i32_0 = arith.constant 0 : i32
    %c0_i32_1 = arith.constant 0 : i32
    return %c0_i32, %c0_i32_0 : i32, i32
  }
  func.func @transform_7(%arg0: i32) -> (i32, i32) {
    %c0_i32 = arith.constant 0 : i32
    %c0_i32_0 = arith.constant 0 : i32
    %c0_i32_1 = arith.constant 0 : i32
    return %c0_i32, %c0_i32_0 : i32, i32
  }
  func.func @transform_8(%arg0: i32) -> (i32, i32) {
    %c0_i32 = arith.constant 0 : i32
    %c0_i32_0 = arith.constant 0 : i32
    return %c0_i32, %arg0 : i32, i32
  }
  func.func @transform_9(%arg0: i32) -> (i32, i32) {
    %c0_i32 = arith.constant 0 : i32
    %c0_i32_0 = arith.constant 0 : i32
    return %c0_i32, %arg0 : i32, i32
  }
}

</mosaic_0001>

<bundles_post_ra>
// kernel: tpu_custom_call.1
= control target key start
LH: loop header
LB: loop body
LE: loop exit
PB: predicated region body
PF: predicated region fallthrough
CT: control target
= control target key end

     0   :  { %15 = vsyncpa [#allocation3], 0  ;;  %vm96_vm0 = vcmask 130048   ;;  %s590_s0 = inlined_call_operand.vmem [shape: f32[128,16], index: 0, kind: input, shape index: {}]   ;;  %s591_s1 = inlined_call_operand.vmem [shape: f32[8,128], index: 1, kind: input, shape index: {}]   ;;  %s592_s2 = inlined_call_operand.vmem [shape: bf16[32,16], index: 2, kind: input, shape index: {}]   ;;  %s593_s3 = inlined_call_operand.vmem [shape: f32[32,1], index: 3, kind: input, shape index: {}]   ;;  %s594_s4 = inlined_call_operand.vmem [shape: bf16[32,32], index: 4, kind: input, shape index: {}]   ;;  %s595_s5 = inlined_call_operand.vmem [shape: f32[32,1], index: 5, kind: input, shape index: {}]   ;;  %s596_s6 = inlined_call_operand.vmem [shape: bf16[8,32], index: 6, kind: input, shape index: {}]   ;;  %s597_s7 = inlined_call_operand.vmem [shape: f32[8,1], index: 7, kind: input, shape index: {}]   ;;  %s598_s8 = inlined_call_operand.hbm [shape: s32[1,128], index: 8, kind: output, shape index: {0}]   ;;  %s599_s9 = inlined_call_operand.hbm [shape: f32[1,128], index: 9, kind: output, shape index: {1}]  }
   0x1   :  { %v48_v0 = vld [vmem:[%s590_s0 + $0x70] sm:$0xff]  ;;  %v49_v1 = vld [vmem:[%s590_s0 + $0x78] sm:$0xff]  ;;  %v46_v3 = vld [vmem:[%s590_s0 + $0x60] sm:$0xff] }
   0x2   :  { %v57_v2 = vpack.c.bf16 %v49_v1, %v48_v0  ;;  %v47_v4 = vld [vmem:[%s590_s0 + $0x68] sm:$0xff] }
   0x4   :  { %v125_v5 = vsel %vm96_vm0, %v57_v2, 0 }
   0x5   :  { %16 = vsyncpa [#allocation5], 0  ;;  %350 = vmatpush.bf16.xpose.msra.mxu3 %v125_v5  ;;  %127 = vmatpush.bf16.xpose.msra.mxu0 %v125_v5  ;;  %v56_v6 = vpack.c.bf16 %v47_v4, %v46_v3  ;;  %v44_v8 = vld [vmem:[%s590_s0 + $0x50] sm:$0xff]  ;;  %v45_v9 = vld [vmem:[%s590_s0 + $0x58] sm:$0xff]  ;;  %v425_v19 = vmov 0   ;;  %vm190_vm1 = vcmask 261120  }
   0x6   :  { %v55_v10 = vpack.c.bf16 %v45_v9, %v44_v8  ;;  %v42_v12 = vld [vmem:[%s590_s0 + $0x40] sm:$0xff]  ;;  %v43_v13 = vld [vmem:[%s590_s0 + $0x48] sm:$0xff]  ;;  %v40_v16 = vld [vmem:[%s590_s0 + $0x30] sm:$0xff]  ;;  %366 = vset.pattern.permute.xlu0 %v425_v19  ;;  %367 = vset.pattern.permute.xlu1 %v425_v19  ;;  %s300_s25 = sshll.u32 %s598_s8, 4  ;;  %s427_s26 = smov [#allocation4]   ;;  %s301_s25 = int_to_ptr.hbm [resolvable:$true] %s300_s25 }
   0x7   :  { %v122_v7 = vsel %vm96_vm0, %v56_v6, 0  ;;  %v54_v14 = vpack.c.bf16 %v43_v13, %v42_v12  ;;  %v41_v17 = vld [vmem:[%s590_s0 + $0x38] sm:$0xff]  ;;  %368 = vset.pattern.permute.xlu2 %v425_v19  ;;  %v38_v21 = vld [vmem:[%s590_s0 + $0x20] sm:$0xff]  ;;  %v39_v22 = vld [vmem:[%s590_s0 + $0x28] sm:$0xff]  ;;  %s309_s27 = sshll.u32 %s427_s26, 4  ;;  %s311_s29 = sshll.u32 %s599_s9, 4  ;;  %s310_s27 = int_to_ptr.vmem [resolvable:$true] %s309_s27  ;;  %s312_s29 = int_to_ptr.hbm [resolvable:$true] %s311_s29 }
   0x8   :  { %v119_v11 = vsel %vm96_vm0, %v55_v10, 0  ;;  %v53_v18 = vpack.c.bf16 %v41_v17, %v40_v16  ;;  %v64_v23 = vld [vmem:[%s593_s3 + $0x10] sm:$0xff]  ;;  %v62_v24 = vld [vmem:[%s593_s3] sm:$0xff]  ;;  %v52_v25 = vpack.c.bf16 %v39_v22, %v38_v21  ;;  %v37_v28 = vld [vmem:[%s590_s0 + $0x18] sm:$0xff] }
   0x9   :  { %v116_v15 = vsel %vm96_vm0, %v54_v14, 0  ;;  %78 = vperm.xlu0 %366, %v64_v23   ;;  %68 = vperm.xlu1 %367, %v62_v24   ;;  %v36_v27 = vld [vmem:[%s590_s0 + $0x10] sm:$0xff]  ;;  %v65_v29 = vld [vmem:[%s593_s3 + $0x18] sm:$0xff]  ;;  %v63_v30 = vld [vmem:[%s593_s3 + $0x8] sm:$0xff] }
   0xa   :  { %v113_v20 = vsel %vm96_vm0, %v53_v18, 0  ;;  %v110_v26 = vsel %vm96_vm0, %v52_v25, 0  ;;  %v51_v31 = vpack.c.bf16 %v37_v28, %v36_v27  ;;  %v34_v33 = vld [vmem:[%s590_s0] sm:$0xff]  ;;  %v35_v34 = vld [vmem:[%s590_s0 + $0x8] sm:$0xff]  ;;  %v158_v46 = vld [vmem:[%s595_s5 + $0x10] sm:$0xff] }
   0xb   :  { %v156_v35 = vld [vmem:[%s595_s5] sm:$0xff]  ;;  %v157_v36 = vld [vmem:[%s595_s5 + $0x8] sm:$0xff]  ;;  %v50_v37 = vpack.c.bf16 %v35_v34, %v34_v33  ;;  %172 = vperm.xlu2 %368, %v158_v46   ;;  %v159_v56 = vld [vmem:[%s595_s5 + $0x18] sm:$0xff] }
   0xc   :  { %v107_v32 = vsel %vm96_vm0, %v51_v31, 0  ;;  %v347_v39 = vld [vmem:[%s592_s2 + $0x8] sm:$0xff]  ;;  %v346_v40 = vld [vmem:[%s592_s2] sm:$0xff] }
   0xd   :  { %351 = vmatpush.bf16.xpose.msra.mxu3 %v122_v7  ;;  %128 = vmatpush.bf16.xpose.msra.mxu0 %v122_v7  ;;  %v104_v38 = vsel %vm96_vm0, %v50_v37, 0  ;;  %v348_v61 = vld [vmem:[%s594_s4] sm:$0xff]  ;;  %v349_v63 = vld [vmem:[%s594_s4 + $0x8] sm:$0xff] }
   0xe   :  { %v223_v62 = vld [vmem:[%s597_s7] sm:$0xff] }
   0xf   :  { %v220_v18 = vld [vmem:[%s596_s6] sm:$0xf] }
  0x10   :  { %v262_v31 = vld [vmem:[%s591_s1] sm:$0xff]  ;;  %s426_s1 = smov [#allocation2]  }
  0x11   :  { %83 = vperm.xlu0 %366, %v65_v29   ;;  %73 = vperm.xlu1 %367, %v63_v30   ;;  %s298_s6 = sshll.u32 %s426_s1, 4  ;;  %s299_s6 = int_to_ptr.vmem [resolvable:$true] %s298_s6 }
  0x13   :  { %177 = vperm.xlu2 %368, %v159_v56  }
  0x15   :  { %352 = vmatpush.bf16.xpose.msra.mxu3 %v119_v11  ;;  %129 = vmatpush.bf16.xpose.msra.mxu0 %v119_v11 }
  0x19   :  { %162 = vperm.xlu0 %366, %v156_v35   ;;  %167 = vperm.xlu1 %367, %v157_v36   ;;  %v270_v35 = vlaneseq }
  0x1b   :  { %226 = vperm.xlu2 %368, %v223_v62  }
  0x1d   :  { %353 = vmatpush.bf16.xpose.msra.mxu3 %v116_v15  ;;  %130 = vmatpush.bf16.xpose.msra.mxu0 %v116_v15 }
  0x25   :  { %354 = vmatpush.bf16.xpose.msra.mxu3 %v113_v20  ;;  %131 = vmatpush.bf16.xpose.msra.mxu0 %v113_v20 }
  0x2d   :  { %355 = vmatpush.bf16.xpose.msra.mxu3 %v110_v26  ;;  %132 = vmatpush.bf16.xpose.msra.mxu0 %v110_v26 }
  0x35   :  { %356 = vmatpush.bf16.xpose.msra.mxu3 %v107_v32  ;;  %133 = vmatpush.bf16.xpose.msra.mxu0 %v107_v32 }
  0x3d   :  { %357 = vmatpush.bf16.xpose.msra.mxu3 %v104_v38  ;;  %134 = vmatpush.bf16.xpose.msra.mxu0 %v104_v38  ;;  %v271_v38 = vshrl.u32 %v270_v35, 7 }
  0x44   :  { %334 = vmatmul.msk.bf16.vlgmr.msra.gmra.mxu3 %vm96_vm0, %v347_v39  ;;  %333 = vmatmul.msk.bf16.vlgmr.msra.gmra.mxu0 %vm96_vm0, %v346_v40 }
  0x65   :  { %v173_v2 = vpop.permute.xlu2 %172 }
  0x6d   :  { %v178_v6 = vpop.permute.xlu2 %177 }
  0x75   :  { %v227_v19 = vpop.permute.xlu2 %226 }
  0x7b   :  { %v79_v42 = vpop.permute.xlu0 %78  ;;  %v69_v43 = vpop.permute.xlu1 %68 }
  0x83   :  { %v84_v47 = vpop.permute.xlu0 %83  ;;  %v74_v49 = vpop.permute.xlu1 %73 }
  0x8b   :  { %v168_v4 = vpop.permute.xlu1 %167  ;;  %v163_v10 = vpop.permute.xlu0 %162 }
  0xc1   :  { %v136_v41 = vpop.f32.mrf.mxu0 }
  0xc2   :  { %v137_v51 = vadd.f32 %v136_v41, %v69_v43  ;;  %v273_v41 = vcvt.s32.f32 %v271_v38 }
  0xc4   :  { %v146_v57 = vmax.f32 %v137_v51, 0.0 }
  0xc7   :  { %v141_v44 = vpop.f32.mrf.mxu3 }
  0xc8   :  { %v142_v48 = vadd.f32 %v141_v44, %v79_v42 }
  0xc9   :  { %v138_v45 = vpop.f32.mrf.mxu0 }
  0xca   :  { %v139_v52 = vadd.f32 %v138_v45, %v74_v49  ;;  %v148_v54 = vmax.f32 %v142_v48, 0.0 }
  0xcc   :  { %v147_v58 = vmax.f32 %v139_v52, 0.0 }
  0xce   :  { %v154_v60 = vpack.c.bf16 %v147_v58, %v146_v57 }
  0xcf   :  { %v143_v50 = vpop.f32.mrf.mxu3 }
  0xd0   :  { %v144_v53 = vadd.f32 %v143_v50, %v84_v47 }
  0xd2   :  { %v149_v55 = vmax.f32 %v144_v53, 0.0 }
  0xd4   :  { %v155_v59 = vpack.c.bf16 %v149_v55, %v148_v54 }
  0xd6   :  { %203 = vmatpush.bf16.msra.mxu1 %v155_v59 }
  0xda   :  { %204 = vmatpush.bf16.msra.mxu1 %v154_v60 }
  0xdd   :  { %343 = vmatmul.msk.bf16.vlgmr.msra.gmra.mxu1 %vm190_vm1, %v348_v61 }
  0xed   :  { %344 = vmatmul.msk.bf16.gmra.mxu1 %vm190_vm1, %v349_v63 }
 0x15a   :  { %v206_v0 = vpop.f32.mrf.mxu1 }
 0x15b   :  { %v207_v11 = vadd.f32 %v206_v0, %v163_v10 }
 0x15d   :  { %v216_v16 = vmax.f32 %v207_v11, 0.0 }
 0x162   :  { %v208_v1 = vpop.f32.mrf.mxu1 }
 0x163   :  { %v209_v8 = vadd.f32 %v208_v1, %v168_v4 }
 0x165   :  { %v217_v14 = vmax.f32 %v209_v8, 0.0 }
 0x167   :  { %v221_v17 = vpack.c.bf16 %v217_v14, %v216_v16 }
 0x16a   :  { %v211_v3 = vpop.f32.mrf.mxu1 }
 0x16b   :  { %v212_v5 = vadd.f32 %v211_v3, %v173_v2 }
 0x16d   :  { %v218_v12 = vmax.f32 %v212_v5, 0.0 }
 0x172   :  { %v213_v7 = vpop.f32.mrf.mxu1 }
 0x173   :  { %v214_v9 = vadd.f32 %v213_v7, %v178_v6 }
 0x175   :  { %v219_v13 = vmax.f32 %v214_v9, 0.0 }
 0x177   :  { %v222_v15 = vpack.c.bf16 %v219_v13, %v218_v12 }
 0x179   :  { %238 = vmatpush.bf16.msra.mxu2 %v222_v15 }
 0x17d   :  { %239 = vmatpush.bf16.msra.mxu2 %v221_v17 }
 0x180   :  { %345 = vmatmul.msk.bf16.vlgmr.msra.gmra.mxu2 %vm190_vm1, %v220_v18 }
 0x203   :  { %v241_v20 = vpop.f32.mrf.mxu2 }
 0x204   :  { %v242_v21 = vadd.f32 %v241_v20, %v227_v19 }
 0x206   :  { %v245_v22 = vrot.slane %v242_v21, 4 }
 0x208   :  { %v246_v23 = vmax.f32 %v242_v21, %v245_v22 }
 0x20a   :  { %v247_v24 = vrot.slane %v246_v23, 2 }
 0x20b   :  { %v243_v25 = vpop.f32.mrf.mxu2 }
 0x20c   :  { %v248_v26 = vmax.f32 %v246_v23, %v247_v24 }
 0x20e   :  { %v249_v27 = vrot.slane %v248_v26, 1 }
 0x210   :  { %v250_v28 = vmax.f32 %v248_v26, %v249_v27 }
 0x212   :  { %v251_v29 = vsub.f32 %v242_v21, %v250_v28 }
 0x214   :  { %v252_v30 = vmul.f32 1.442695, %v251_v29 }
 0x216   :  { %369 = vpow2.f32 %v252_v30 }
 0x21c   :  { %v370_v32 = vpop.eup %369 }
 0x21d   :  { %v263_v33 = vmul.f32 %v370_v32, %v262_v31  ;;  %v254_v43 = vrot.slane %v370_v32, 4 }
 0x21f   :  { %v264_v34 = vrot.slane %v263_v33, 4  ;;  %v255_v46 = vadd.f32 %v370_v32, %v254_v43 }
 0x221   :  { %v265_v36 = vmax.f32 %v263_v33, %v264_v34  ;;  %v256_v49 = vrot.slane %v255_v46, 2 }
 0x223   :  { %v266_v37 = vrot.slane %v265_v36, 2  ;;  %v257_v52 = vadd.f32 %v256_v49, %v255_v46 }
 0x225   :  { %v267_v39 = vmax.f32 %v265_v36, %v266_v37  ;;  %v258_v56 = vrot.slane %v257_v52, 1 }
 0x227   :  { %v268_v40 = vrot.slane %v267_v39, 1  ;;  %v259_v59 = vadd.f32 %v258_v56, %v257_v52 }
 0x229   :  { %v269_v42 = vmax.f32 %v267_v39, %v268_v40  ;;  %371 = vlog2.f32 %v259_v59 }
 0x22b   :  { %vm272_vm2 = vcmp.ge.f32.partialorder %v263_v33, %v269_v42 }
 0x22c   :  { %v274_v44 = vsel %vm272_vm2, %v273_v41, 8.0 }
 0x22d   :  { %v275_v45 = vrot.slane %v274_v44, 4 }
 0x22f   :  { %v276_v47 = vmin.f32 %v274_v44, %v275_v45  ;;  %v372_v1 = vpop.eup %371 }
 0x230   :  { %v261_v3 = vmul.f32 0.6931472, %v372_v1 }
 0x231   :  { %v277_v48 = vrot.slane %v276_v47, 2 }
 0x233   :  { %v278_v50 = vmin.f32 %v276_v47, %v277_v48 }
 0x235   :  { %v279_v51 = vrot.slane %v278_v50, 1 }
 0x237   :  { %v280_v53 = vmin.f32 %v278_v50, %v279_v51 }
 0x239   :  { %vm358_vm3 = vcmp.lt.s32.totalorder %v280_v53, 0  ;;  %v359_v54 = vceil.f32 %v280_v53  ;;  %v360_v55 = vfloor.f32 %v280_v53 }
 0x23b   :  { %v361_v57 = vsel %vm358_vm3, %v359_v54, %v360_v55 }
 0x23c   :  { %v362_v58 = vcvt.f32.s32 %v361_v57 }
 0x23e   :  { %vm282_vm4 = vcmp.eq.s32.totalorder %v271_v38, %v362_v58  ;;  %291 = vst [vmem:[#allocation2] sm:$0x1] %v362_v58 }
 0x23f   :  { %v283_v60 = vsel %vm282_vm4, %v251_v29, 0.0  ;;  %303 = dma.vmem_to_hbm [thread:$0]  %s299_s6, 16, %s301_s25, [#allocation3]  }
 0x240   :  { %v284_v61 = vrot.slane %v283_v60, 4 }
 0x242   :  { %v285_v62 = vadd.f32 %v284_v61, %v283_v60 }
 0x244   :  { %v286_v63 = vrot.slane %v285_v62, 2 }
 0x246   :  { %v287_v0 = vadd.f32 %v286_v63, %v285_v62 }
 0x248   :  { %v288_v2 = vrot.slane %v287_v0, 1 }
 0x24a   :  { %v289_v4 = vadd.f32 %v288_v2, %v287_v0 }
 0x24c   :  { %v290_v5 = vsub.f32 %v289_v4, %v261_v3 }
 0x24e   :  { %292 = vst [vmem:[#allocation4] sm:$0x1] %v290_v5 }
 0x24f   :  { %314 = dma.vmem_to_hbm [thread:$0]  %s310_s27, 16, %s312_s29, [#allocation5]  }
 0x250   :  { %421 = dma.done.wait [#allocation3], 16  }
 0x251   :  { %422 = vsyncadd [#allocation3], 4294967280 }
 0x252   :  { %423 = dma.done.wait [#allocation5], 16  }
 0x253   :  { %424 = vsyncadd [#allocation5], 4294967280 }
 0x254   :  { %323 = vsyncpa [#allocation3], 1 }
 0x255   :  { %324 = vsyncpa [#allocation5], 1 }

</bundles_post_ra>
